<compile_context>
chip_gen: v6e
topology: v6e:2x2x1
jax: 0.10.0
libtpu: 0.0.40
codegen_flags: <defaults>
</compile_context>

<pallas_src>
import functools

import jax
import jax.numpy as jnp
from jax.experimental import pallas as pl
from jax.experimental.pallas import tpu as pltpu


_LANES = 128      # TPU vreg lane width
_SUBLANES = 8     # TPU vreg sublane height for 32-bit types


def _round_up(x, m):
    return (x + m - 1) // m * m


def _default_num_partials():
    """One partial sum per TensorCore: 2 on megacore chips (v4/v5p/v7x), else 1."""
    try:
        dev = jax.devices()[0]
        if getattr(dev, "platform", None) != "tpu":
            return 1
        for attr in ("num_cores", "core_count", "num_tensorcores"):
            n = getattr(dev, attr, None)
            if isinstance(n, int) and n > 0:
                return min(n, 2)
        kind = str(getattr(dev, "device_kind", "")).lower()
        if any(tag in kind for tag in ("v7", "v4", "v5p", "v5 p")):
            return 2
    except Exception:      # detection is best-effort only; 1 is always correct
        pass
    return 1


def _focal_loss_kernel(xct_ref, alpha_ref, t_ref, out_ref, tab_ref, *,
                       gamma, valid_rows, need_mask):
    """One grid step of the (P, S) grid.

    xct_ref  : (C, C)  f32, xct[i, j] = x2[j, i] (first C rows of x2, class axis
               on sublanes).  Resident across the whole grid.
    alpha_ref: (1, C)  f32 per-class alpha (ones when alpha is None). Resident.
    t_ref    : (TR, 128) i32 lane-dense targets for this tile (-1 = padding).
    out_ref  : (1, 1, 1) f32 partial sum for this parallel part (resident across
               the inner 'arbitrary' axis -> used directly as the accumulator).
    tab_ref  : (1, C)  f32 VMEM scratch: per-class loss table, computed once per
               parallel part (hoisted out of the hot loop).
    """
    p = pl.program_id(0)
    s = pl.program_id(1)

    @pl.when(s == 0)
    def _init():
        out_ref[...] = jnp.zeros_like(out_ref)
        # ---- per-class loss table, lane-dense (1, C), VPU/EUP/XLU only ------
        # logpt[c] = log_softmax(x2[c, :])[0]; the reduction over the small
        # class axis runs across sublanes of the transposed (C, C) block.
        xct = xct_ref[...]                                        # (C, C) f32
        m = jnp.max(xct, axis=0, keepdims=True)                   # (1, C)
        lse = m + jnp.log(jnp.sum(jnp.exp(xct - m), axis=0, keepdims=True))
        logpt_c = xct[0:1, :] - lse                               # (1, C)
        pt_c = jnp.exp(logpt_c)                                   # (1, C)
        if gamma == 0.0:
            w_c = jnp.ones_like(pt_c)
        elif float(gamma).is_integer() and gamma > 0:
            w_c = (1.0 - pt_c) ** int(gamma)
        else:
            w_c = jnp.exp(gamma * jnp.log(1.0 - pt_c))
        # loss[c] = -(1 - pt_c)**gamma * (alpha[c] * logpt_c)  (alpha scales
        # logpt only; focal weight uses the *unscaled* pt, as in the reference).
        tab_ref[...] = (-1.0 * w_c) * (alpha_ref[...] * logpt_c)  # (1, C)

    # ---- stream this tile of targets --------------------------------------
    t = t_ref[...]                                                # (TR, 128) i32
    if need_mask:
        # Rows past the real target array (partial / clamped grid blocks) hold
        # unspecified data; mask them so they contribute exactly 0.
        blk = p * pl.num_programs(1) + s
        row0 = blk * t.shape[0]
        rid = row0 + jax.lax.broadcasted_iota(jnp.int32, t.shape, 0)
        t = jnp.where(rid < valid_rows, t, -1)

    # ---- VPU "gather": tile[r, l] = loss_c[ t[r, l] ] ----------------------
    # cmp + vsel per class (classes are mutually exclusive; -1 padding matches
    # no class and stays at the zero init).
    # TODO(synk): for C >~ 48 chunk this unroll (lax.fori_loop over class
    # chunks) or switch to a lane-one-hot + MXU contraction / wrapper-side
    # gather to avoid VALU / vreg-pressure blowup; small C is the common case.
    loss_c = tab_ref[...]                                         # (1, C)
    num_classes = loss_c.shape[1]
    tile = jnp.zeros(t.shape, jnp.float32)
    for c in range(num_classes):                                  # static unroll
        tile = jnp.where(t == c, loss_c[0:1, c:c + 1], tile)

    # Reduce this tile and accumulate into the resident output block.
    out_ref[...] += jnp.sum(tile, axis=(0, 1), keepdims=True)[None]


def focal_loss(x, target, *, gamma=0.0, alpha=None, size_average=True,
               tile_rows=512, num_partials=None):
    """Pallas TPU implementation of FocalLoss.forward (clcarwin variant).

    Reproduces the reference's quirky `logpt.gather(0, target)`:
    logpt_i = log_softmax(x2)[target_i, 0].  Targets are assumed to be class
    ids in [0, C) (required anyway whenever alpha is given).  Targets outside
    [0, C) contribute 0 here, where PyTorch would raise an OOB gather error.
    """
    # ---- (C, C) logits slab WITHOUT materialising the (M, C) transpose ------
    if x.ndim > 2:
        N, C = int(x.shape[0]), int(x.shape[1])
        HW = 1
        for d in x.shape[2:]:
            HW *= int(d)
        M = N * HW
        if HW >= C:
            # rows 0..C-1 of x2 are x[0, :, 0..C-1]; xct[i, j] = x2[j, i].
            xct = x[0].reshape(C, HW)[:, :C]                      # slice only
        else:
            # degenerate H*W < C: build only the few needed rows of x2.
            k = min(C, M)
            n_need = -(-k // HW)
            xh = x.reshape(N, C, HW)[:n_need]                     # tiny
            x2h = jnp.transpose(xh, (0, 2, 1)).reshape(n_need * HW, C)[:k]
            xct = x2h.T
            if k < C:
                # classes >= M would be an OOB gather in the reference.
                xct = jnp.pad(xct, ((0, 0), (0, C - k)))
    else:
        N, C = int(x.shape[0]), int(x.shape[1])
        M = N
        k = min(C, M)
        xct = x[:k, :].T
        if k < C:
            xct = jnp.pad(xct, ((0, 0), (0, C - k)))
    xct = xct.astype(jnp.float32)                                 # (C, C)

    # ---- per-class alpha table (mirrors __init__ handling) ------------------
    if alpha is None:
        alpha_vec = jnp.ones((C,), jnp.float32)
    else:
        if isinstance(alpha, (float, int)):
            a = jnp.array([alpha, 1.0 - alpha], jnp.float32)
        elif isinstance(alpha, (list, tuple)):
            a = jnp.asarray(alpha, jnp.float32)
        else:
            a = jnp.asarray(alpha, jnp.float32).reshape(-1)
        if int(a.shape[0]) >= C:
            alpha_vec = a[:C]
        else:
            # classes >= len(alpha) would be an OOB gather in the reference;
            # give them weight 1.0 here (documented divergence).
            alpha_vec = jnp.concatenate(
                [a, jnp.ones((C - int(a.shape[0]),), jnp.float32)])
    alpha_row = alpha_vec.reshape(1, C)

    # ---- lane-dense target stream (rows, 128) i32 ---------------------------
    # Only the ragged tail is padded (zero bytes moved when M % 1024 == 0).
    # TODO(synk): optional int8/int16 target streaming (C <= 127) would halve /
    # quarter target HBM traffic on v5e; int32 kept as the safe default here.
    t_flat = target.reshape(-1).astype(jnp.int32)
    rows = max(1, -(-M // _LANES))                    # ceil(M / 128)
    rows_eff = _round_up(rows, _SUBLANES)
    pad = rows_eff * _LANES - M
    if pad:
        t_flat = jnp.pad(t_flat, (0, pad), constant_values=-1)
    t2 = t_flat.reshape(rows_eff, _LANES)

    # ---- tiling: (P parallel parts) x (S inner steps) of TR rows ------------
    if num_partials is None:
        num_partials = _default_num_partials()
    TR = max(_SUBLANES, _round_up(min(int(tile_rows), rows_eff), _SUBLANES))
    nblocks = -(-rows_eff // TR)
    P = max(1, min(int(num_partials), nblocks))
    S = -(-nblocks // P)
    # mask only when the grid over-covers the target array
    need_mask = not (nblocks * TR == rows_eff and P * S == nblocks)
    last_block = nblocks - 1

    t_spec = pl.BlockSpec(
        (TR, _LANES),
        # clamp over-covering blocks to the last real block; their rows are
        # masked in-kernel so they contribute 0.
        lambda p, s: (jnp.minimum(p * S + s, last_block), 0))

    kernel = functools.partial(
        _focal_loss_kernel, gamma=float(gamma),
        valid_rows=rows_eff, need_mask=need_mask)

    elems = rows_eff * _LANES
    cost = pl.CostEstimate(                            # real kernel traffic only
        flops=int(2 * C * elems + 12 * C * C),
        transcendentals=int(3 * C * P),
        bytes_accessed=int(4 * elems + 4 * C * C + 4 * C + 4 * P),
    )

    partials = pl.pallas_call(
        kernel,
        out_shape=jax.ShapeDtypeStruct((P, 1, 1), jnp.float32),
        grid_spec=pltpu.PrefetchScalarGridSpec(
            num_scalar_prefetch=0,
            grid=(P, S),
            in_specs=[
                pl.BlockSpec((C, C), lambda p, s: (0, 0)),        # resident
                pl.BlockSpec((1, C), lambda p, s: (0, 0)),        # resident
                t_spec,
            ],
            out_specs=pl.BlockSpec((1, 1, 1), lambda p, s: (p, 0, 0)),
            scratch_shapes=[pltpu.VMEM((1, C), jnp.float32)],     # loss table
        ),
        compiler_params=pltpu.CompilerParams(
            dimension_semantics=("parallel", "arbitrary")),
        cost_estimate=cost,
    )(xct, alpha_row, t2)

    total = jnp.sum(partials)                 # add per-core partial sums
    if size_average:
        # M == 0 gives nan, matching torch .mean() on an empty tensor.
        total = total / jnp.float32(M)
    return total


def _focal_loss_ref(x, target, gamma, alpha_vec, size_average):
    """Pure-JAX reference mirroring the PyTorch forward exactly."""
    N, C = x.shape[0], x.shape[1]
    x2 = x.reshape(N, C, -1).transpose(0, 2, 1).reshape(-1, C)
    t = target.reshape(-1).astype(jnp.int32)
    logsm = jax.nn.log_softmax(x2, axis=1)
    logpt = logsm[t, 0]                               # gather along dim=0, col 0
    pt = jnp.exp(logpt)
    if alpha_vec is not None:
        logpt = logpt * alpha_vec[t]
    loss = -1.0 * (1.0 - pt) ** gamma * logpt
    return loss.mean() if size_average else loss.sum()


if __name__ == "__main__":
    key = jax.random.PRNGKey(0)
    k1, k2, k3, k4 = jax.random.split(key, 4)

    # config 1: per-class alpha, mean reduction (N,C,H,W = 2,4,16,16)
    N, C, H, W = 2, 4, 16, 16
    x = jax.random.normal(k1, (N, C, H, W), jnp.float32)
    target = jax.random.randint(k2, (N, H, W), 0, C, dtype=jnp.int32)
    gamma = 2.0
    alpha = [0.1, 0.2, 0.3, 0.4]
    loss = jax.block_until_ready(
        focal_loss(x, target, gamma=gamma, alpha=alpha, size_average=True))
    ref = _focal_loss_ref(x, target, gamma, jnp.array(alpha, jnp.float32), True)
    assert jnp.allclose(loss, ref, rtol=1e-5, atol=1e-5), (loss, ref)

    # config 2: no alpha, sum reduction (same inputs, different wrapper path)
    loss2 = jax.block_until_ready(
        focal_loss(x, target, gamma=gamma, alpha=None, size_average=False))
    ref2 = _focal_loss_ref(x, target, gamma, None, False)
    assert jnp.allclose(loss2, ref2, rtol=1e-5, atol=1e-5), (loss2, ref2)

    # config 3: binary, scalar alpha, non-integer gamma; ragged M exercises the
    # tail pad, in-kernel row mask, partial last block, and P=2 clamped grid.
    N3, C3, H3, W3 = 2, 2, 33, 32
    x3 = jax.random.normal(k3, (N3, C3, H3, W3), jnp.float32)
    target3 = jax.random.randint(k4, (N3, H3, W3), 0, C3, dtype=jnp.int32)
    loss3 = jax.block_until_ready(
        focal_loss(x3, target3, gamma=1.5, alpha=0.25, size_average=True,
                   tile_rows=8, num_partials=2))
    ref3 = _focal_loss_ref(x3, target3, 1.5,
                           jnp.array([0.25, 0.75], jnp.float32), True)
    assert jnp.allclose(loss3, ref3, rtol=1e-5, atol=1e-5), (loss3, ref3)

    print("KERNEL_OK")
</pallas_src>

<mosaic_0001>
module attributes {stable_mosaic.version = 11 : i64} {
  func.func @_focal_loss_kernel(%arg0: i32, %arg1: i32, %arg2: memref<4x4xf32, #tpu.memory_space<vmem>>, %arg3: memref<1x4xf32, #tpu.memory_space<vmem>>, %arg4: memref<8x128xi32, #tpu.memory_space<vmem>>, %arg5: memref<1x1x1xf32, #tpu.memory_space<vmem>>, %arg6: memref<1x4xf32, #tpu.memory_space<vmem>>) attributes {dimension_semantics = [#tpu.dimension_semantics<parallel>, #tpu.dimension_semantics<arbitrary>], iteration_bounds = array<i64: 1, 1>, scalar_prefetch = 0 : i64, scratch_operands = 1 : i64, tpu.core_type = #tpu.core_type<tc>, window_params = [{pipeline_mode = #tpu.pipeline_mode<synchronous>, transform_indices = @transform_0, window_bounds = array<i64: 4, 4>}, {pipeline_mode = #tpu.pipeline_mode<synchronous>, transform_indices = @transform_1, window_bounds = array<i64: 1, 4>}, {transform_indices = @transform_2, window_bounds = array<i64: 8, 128>}, {transform_indices = @transform_3, window_bounds = array<i64: 1, 1, 1>}]} {
    %c0_i32 = arith.constant 0 : i32
    %0 = arith.cmpi eq, %arg1, %c0_i32 : i32
    %1 = arith.extui %0 : i1 to i32
    %c0_i32_0 = arith.constant 0 : i32
    %2 = arith.cmpi ne, %1, %c0_i32_0 : i32
    scf.if %2 {
      %cst_12 = arith.constant 0.000000e+00 : f32
      %39 = vector.broadcast %cst_12 : f32 to vector<1x1x1xf32>
      %c0_13 = arith.constant 0 : index
      %c0_14 = arith.constant 0 : index
      %c0_15 = arith.constant 0 : index
      %40 = vector.load %arg5[%c0_13, %c0_14, %c0_15] : memref<1x1x1xf32, #tpu.memory_space<vmem>>, vector<1x1x1xf32>
      tpu.vector_store %arg5[%c0_13, %c0_14, %c0_15], %39 {strides = array<i32>} : memref<1x1x1xf32, #tpu.memory_space<vmem>>, vector<1x1x1xf32>,
      %c0_16 = arith.constant 0 : index
      %c0_17 = arith.constant 0 : index
      %41 = vector.load %arg2[%c0_16, %c0_17] : memref<4x4xf32, #tpu.memory_space<vmem>>, vector<4x4xf32>
      %cst_18 = arith.constant dense<0xFF800000> : vector<4xf32>
      %42 = vector.multi_reduction <maximumf>, %41, %cst_18 [0] : vector<4x4xf32> to vector<4xf32>
      %43 = vector.shape_cast %42 : vector<4xf32> to vector<1x4xf32>
      %44 = vector.broadcast %43 : vector<1x4xf32> to vector<4x4xf32>
      %45 = arith.subf %41, %44 : vector<4x4xf32>
      %46 = math.exp %45 : vector<4x4xf32>
      %cst_19 = arith.constant dense<0.000000e+00> : vector<4xf32>
      %47 = vector.multi_reduction <add>, %46, %cst_19 [0] : vector<4x4xf32> to vector<4xf32>
      %48 = vector.shape_cast %47 : vector<4xf32> to vector<1x4xf32>
      %49 = math.log %48 : vector<1x4xf32>
      %50 = arith.addf %43, %49 : vector<1x4xf32>
      %51 = vector.extract_strided_slice %41 {offsets = [0, 0], sizes = [1, 4], strides = [1, 1]} : vector<4x4xf32> to vector<1x4xf32>
      %52 = arith.subf %51, %50 : vector<1x4xf32>
      %53 = math.exp %52 : vector<1x4xf32>
      %cst_20 = arith.constant 1.000000e+00 : f32
      %54 = vector.broadcast %cst_20 : f32 to vector<1x4xf32>
      %55 = arith.subf %54, %53 : vector<1x4xf32>
      %56 = arith.mulf %55, %55 : vector<1x4xf32>
      %cst_21 = arith.constant -1.000000e+00 : f32
      %57 = vector.broadcast %cst_21 : f32 to vector<1x4xf32>
      %58 = arith.mulf %57, %56 : vector<1x4xf32>
      %c0_22 = arith.constant 0 : index
      %c0_23 = arith.constant 0 : index
      %59 = vector.load %arg3[%c0_22, %c0_23] : memref<1x4xf32, #tpu.memory_space<vmem>>, vector<1x4xf32>
      %60 = arith.mulf %59, %52 : vector<1x4xf32>
      %61 = arith.mulf %58, %60 : vector<1x4xf32>
      %c0_24 = arith.constant 0 : index
      %c0_25 = arith.constant 0 : index
      %62 = vector.load %arg6[%c0_24, %c0_25] : memref<1x4xf32, #tpu.memory_space<vmem>>, vector<1x4xf32>
      tpu.vector_store %arg6[%c0_24, %c0_25], %61 {strides = array<i32>} : memref<1x4xf32, #tpu.memory_space<vmem>>, vector<1x4xf32>,
    } else {
    }
    %c0 = arith.constant 0 : index
    %c0_1 = arith.constant 0 : index
    %3 = vector.load %arg4[%c0, %c0_1] : memref<8x128xi32, #tpu.memory_space<vmem>>, vector<8x128xi32>
    %c0_2 = arith.constant 0 : index
    %c0_3 = arith.constant 0 : index
    %4 = vector.load %arg6[%c0_2, %c0_3] : memref<1x4xf32, #tpu.memory_space<vmem>>, vector<1x4xf32>
    %cst = arith.constant 0.000000e+00 : f32
    %5 = vector.broadcast %cst : f32 to vector<8x128xf32>
    %c0_i32_4 = arith.constant 0 : i32
    %6 = vector.broadcast %c0_i32_4 : i32 to vector<8x128xi32>
    %7 = arith.cmpi eq, %3, %6 : vector<8x128xi32>
    %8 = vector.extract_strided_slice %4 {offsets = [0, 0], sizes = [1, 1], strides = [1, 1]} : vector<1x4xf32> to vector<1x1xf32>
    %9 = vector.shape_cast %8 : vector<1x1xf32> to vector<1x1xf32>
    %10 = vector.broadcast %9 : vector<1x1xf32> to vector<8x128xf32>
    %11 = arith.select %7, %10, %5 : vector<8x128xi1>, vector<8x128xf32>
    %c1_i32 = arith.constant 1 : i32
    %12 = vector.broadcast %c1_i32 : i32 to vector<8x128xi32>
    %13 = arith.cmpi eq, %3, %12 : vector<8x128xi32>
    %14 = vector.extract_strided_slice %4 {offsets = [0, 1], sizes = [1, 1], strides = [1, 1]} : vector<1x4xf32> to vector<1x1xf32>
    %15 = vector.shape_cast %14 : vector<1x1xf32> to vector<1x1xf32>
    %16 = vector.broadcast %15 : vector<1x1xf32> to vector<8x128xf32>
    %17 = arith.select %13, %16, %11 : vector<8x128xi1>, vector<8x128xf32>
    %c2_i32 = arith.constant 2 : i32
    %18 = vector.broadcast %c2_i32 : i32 to vector<8x128xi32>
    %19 = arith.cmpi eq, %3, %18 : vector<8x128xi32>
    %20 = vector.extract_strided_slice %4 {offsets = [0, 2], sizes = [1, 1], strides = [1, 1]} : vector<1x4xf32> to vector<1x1xf32>
    %21 = vector.shape_cast %20 : vector<1x1xf32> to vector<1x1xf32>
    %22 = vector.broadcast %21 : vector<1x1xf32> to vector<8x128xf32>
    %23 = arith.select %19, %22, %17 : vector<8x128xi1>, vector<8x128xf32>
    %c3_i32 = arith.constant 3 : i32
    %24 = vector.broadcast %c3_i32 : i32 to vector<8x128xi32>
    %25 = arith.cmpi eq, %3, %24 : vector<8x128xi32>
    %26 = vector.extract_strided_slice %4 {offsets = [0, 3], sizes = [1, 1], strides = [1, 1]} : vector<1x4xf32> to vector<1x1xf32>
    %27 = vector.shape_cast %26 : vector<1x1xf32> to vector<1x1xf32>
    %28 = vector.broadcast %27 : vector<1x1xf32> to vector<8x128xf32>
    %29 = arith.select %25, %28, %23 : vector<8x128xi1>, vector<8x128xf32>
    %c0_5 = arith.constant 0 : index
    %c0_6 = arith.constant 0 : index
    %c0_7 = arith.constant 0 : index
    %30 = vector.load %arg5[%c0_5, %c0_6, %c0_7] : memref<1x1x1xf32, #tpu.memory_space<vmem>>, vector<1x1x1xf32>
    %31 = vector.shape_cast %29 : vector<8x128xf32> to vector<1x8x128xf32>
    %cst_8 = arith.constant dense<0.000000e+00> : vector<1xf32>
    %32 = vector.multi_reduction <add>, %31, %cst_8 [1, 2] : vector<1x8x128xf32> to vector<1xf32>
    %33 = vector.shape_cast %32 : vector<1xf32> to vector<1x1x1xf32>
    %34 = vector.extract %33[0, 0, 0] : f32 from vector<1x1x1xf32>
    %35 = vector.broadcast %34 : f32 to vector<1x1xf32>
    %36 = vector.shape_cast %35 : vector<1x1xf32> to vector<1x1x1xf32>
    %37 = arith.addf %30, %36 : vector<1x1x1xf32>
    %c0_9 = arith.constant 0 : index
    %c0_10 = arith.constant 0 : index
    %c0_11 = arith.constant 0 : index
    %38 = vector.load %arg5[%c0_9, %c0_10, %c0_11] : memref<1x1x1xf32, #tpu.memory_space<vmem>>, vector<1x1x1xf32>
    tpu.vector_store %arg5[%c0_9, %c0_10, %c0_11], %37 {strides = array<i32>} : memref<1x1x1xf32, #tpu.memory_space<vmem>>, vector<1x1x1xf32>,
    return
  }
  func.func @transform_0(%arg0: i32, %arg1: i32) -> (i32, i32) {
    %c0_i32 = arith.constant 0 : i32
    %c0_i32_0 = arith.constant 0 : i32
    %c0_i32_1 = arith.constant 0 : i32
    return %c0_i32, %c0_i32_0 : i32, i32
  }
  func.func @transform_1(%arg0: i32, %arg1: i32) -> (i32, i32) {
    %c0_i32 = arith.constant 0 : i32
    %c0_i32_0 = arith.constant 0 : i32
    %c0_i32_1 = arith.constant 0 : i32
    return %c0_i32, %c0_i32_0 : i32, i32
  }
  func.func @transform_2(%arg0: i32, %arg1: i32) -> (i32, i32) {
    %c1_i32 = arith.constant 1 : i32
    %0 = arith.muli %arg0, %c1_i32 : i32
    %1 = arith.addi %0, %arg1 : i32
    %c0_i32 = arith.constant 0 : i32
    %2 = arith.minsi %1, %c0_i32 : i32
    %c0_i32_0 = arith.constant 0 : i32
    %c0_i32_1 = arith.constant 0 : i32
    return %2, %c0_i32_0 : i32, i32
  }
  func.func @transform_3(%arg0: i32, %arg1: i32) -> (i32, i32, i32) {
    %c0_i32 = arith.constant 0 : i32
    %c0_i32_0 = arith.constant 0 : i32
    %c0_i32_1 = arith.constant 0 : i32
    return %arg0, %c0_i32, %c0_i32_0 : i32, i32, i32
  }
}

</mosaic_0001>

<bundles_post_ra>
// kernel: tpu_custom_call.1
= control target key start
LH: loop header
LB: loop body
LE: loop exit
PB: predicated region body
PF: predicated region fallthrough
CT: control target
= control target key end

     0   :  { %8 = vsyncpa [#allocation4], 0  ;;  %s279_s0 = inlined_call_operand.hbm [shape: f32[4,4], index: 0, kind: input, shape index: {}]   ;;  %s280_s1 = inlined_call_operand.vmem [shape: f32[1,4], index: 1, kind: input, shape index: {}]   ;;  %s281_s2 = inlined_call_operand.hbm [shape: s32[8,128], index: 2, kind: input, shape index: {}]   ;;  %s282_s3 = inlined_call_operand.hbm [shape: f32[1,1,1], index: 3, kind: output, shape index: {}]  }
   0x1   :  { %9 = vsyncpa [#allocation7], 0 }
   0x2   :  { %10 = vsyncpa [#allocation5], 0  ;;  %s237_s12 = smov [#allocation3]   ;;  %s238_s14 = smov [#allocation6]  }
   0x3   :  { %s17_s13 = sshll.u32 %s237_s12, 4  ;;  %s34_s15 = sshll.u32 %s238_s14, 4  ;;  %s18_s13 = int_to_ptr.vmem [resolvable:$true] %s17_s13  ;;  %s35_s15 = int_to_ptr.vmem [resolvable:$true] %s34_s15 }
   0x4   :  { %s179_s16 = scalar_lea.vmem %s18_s13, 64  ;;  %p184_p1 = scmp.lt.s32.totalorder %s18_s13, %s18_s13 }
   0x5   :  { %p180_p0 = scmp.ne.s32.totalorder %s18_s13, %s179_s16  ;;  %p185_p2 = scmp.lt.s32.totalorder %s179_s16, %s179_s16 }
   0x7   :  { %p186_p3 = por %p185_p2, %p184_p1 }
   0x9   :  { %p187_p4 = pnand %p186_p3, %p180_p0 }
   0xb   :  { %190 = shalt.err (!%p187_p4)
}
   0xc   :  { %20 = dma.hbm_to_vmem [thread:$0]  %s279_s0, 64, %s18_s13, [#allocation4]  }
   0xd   :  { %s199_s19 = scalar_lea.vmem %s35_s15, 128  ;;  %p204_p6 = scmp.lt.s32.totalorder %s35_s15, %s35_s15 }
   0xe   :  { %p200_p5 = scmp.ne.s32.totalorder %s35_s15, %s199_s19  ;;  %p205_p7 = scmp.lt.s32.totalorder %s199_s19, %s199_s19 }
  0x10   :  { %p206_p8 = por %p205_p7, %p204_p6 }
  0x12   :  { %p207_p9 = pnand %p206_p8, %p200_p5 }
  0x14   :  { %210 = shalt.err (!%p207_p9)
}
  0x15   :  { %37 = dma.hbm_to_vmem [thread:$0]  %s281_s2, 128, %s35_s15, [#allocation7]  }
  0x16   :  { %231 = dma.done.wait [#allocation4], 64  }
  0x17   :  { %232 = vsyncadd [#allocation4], 4294967232 }
  0x18   :  { %233 = dma.done.wait [#allocation7], 128  }
  0x19   :  { %234 = vsyncadd [#allocation7], 4294967168  ;;  %vm51_vm0 = vcmask 0   ;;  %v239_v0 = vmov 0.0   ;;  %v240_v1 = vmov 0   ;;  %v241_v2 = vmov 2  }
  0x1a   :  { %52 = vst.msk [vmem:[#allocation8] sm:$0x1] %vm51_vm0, %v239_v0  ;;  %160 = vset.pattern.permute.xlu0 %v240_v1  ;;  %162 = vset.pattern.permute.xlu1 %v241_v2  ;;  %vm54_vm1 = vcmask 27648   ;;  %v53_v3 = vld [vmem:[#allocation3] sm:$0xf]  ;;  %vm84_vm2 = vcmask 24576  }
  0x1b   :  { %v55_v4 = vsel %vm54_vm1, %v53_v3, -inf  ;;  %v81_v27 = vld [vmem:[%s280_s1] sm:$0x1]  ;;  %v242_v34 = vmov 1   ;;  %v243_v35 = vmov 3   ;;  %v86_v36 = vld [vmem:[#allocation6] sm:$0xff] }
  0x1c   :  { %v56_v5 = vrot.slane %v55_v4, 4  ;;  %vm88_vm3 = vcmp.eq.s32.totalorder %v86_v36, 0  ;;  %vm99_vm4 = vcmp.eq.s32.totalorder %v86_v36, 1  ;;  %vm105_vm5 = vcmp.eq.s32.totalorder %v86_v36, 2  ;;  %s244_s1 = smov [#allocation8]  }
  0x1d   :  { %vm111_vm6 = vcmp.eq.s32.totalorder %v86_v36, 3  ;;  %s137_s22 = sshll.u32 %s244_s1, 4  ;;  %s138_s22 = int_to_ptr.vmem [resolvable:$true] %s137_s22 }
  0x1e   :  { %v57_v6 = vmax.f32 %v55_v4, %v56_v5  ;;  %s211_s24 = scalar_lea.vmem %s138_s22, 16  ;;  %s215_s25 = scalar_lea.vmem %s138_s22, 32 }
  0x1f   :  { %p212_p10 = scmp.ne.s32.totalorder %s138_s22, %s211_s24  ;;  %p216_p11 = scmp.lt.s32.totalorder %s138_s22, %s138_s22 }
  0x20   :  { %v58_v7 = vrot.slane %v57_v6, 2  ;;  %p217_p12 = scmp.lt.s32.totalorder %s215_s25, %s211_s24 }
  0x21   :  { %v117_v52 = vld [vmem:[#allocation8] sm:$0x1] }
  0x22   :  { %v59_v8 = vmax.f32 %v57_v6, %v58_v7  ;;  %p218_p13 = por %p217_p12, %p216_p11 }
  0x24   :  { %v60_v9 = vrot.slane %v59_v8, 1  ;;  %p219_p0 = pnand %p218_p13, %p212_p10 }
  0x26   :  { %v61_v10 = vmax.f32 %v59_v8, %v60_v9 }
  0x28   :  { %v62_v11 = vsub.f32 %v53_v3, %v61_v10 }
  0x2a   :  { %v63_v12 = vmul.f32 1.442695, %v62_v11 }
  0x2c   :  { %165 = vpow2.f32 %v63_v12 }
  0x39   :  { %v166_v13 = vpop.eup %165 }
  0x3a   :  { %v65_v14 = vsel %vm54_vm1, %v166_v13, 0.0 }
  0x3b   :  { %v66_v15 = vrot.slane %v65_v14, 4 }
  0x3d   :  { %v67_v16 = vadd.f32 %v66_v15, %v65_v14 }
  0x3f   :  { %v68_v17 = vrot.slane %v67_v16, 2 }
  0x41   :  { %v69_v18 = vadd.f32 %v68_v17, %v67_v16 }
  0x43   :  { %v70_v19 = vrot.slane %v69_v18, 1 }
  0x45   :  { %v71_v20 = vadd.f32 %v70_v19, %v69_v18 }
  0x47   :  { %167 = vlog2.f32 %v71_v20 }
  0x54   :  { %v168_v21 = vpop.eup %167 }
  0x55   :  { %v73_v22 = vmul.f32 0.6931472, %v168_v21 }
  0x57   :  { %v74_v23 = vadd.f32 %v73_v22, %v61_v10 }
  0x59   :  { %v75_v24 = vsub.f32 %v53_v3, %v74_v23 }
  0x5b   :  { %v76_v25 = vmul.f32 1.442695, %v75_v24  ;;  %v82_v30 = vmul.f32 %v81_v27, %v75_v24 }
  0x5d   :  { %169 = vpow2.f32 %v76_v25 }
  0x6a   :  { %v170_v26 = vpop.eup %169 }
  0x6b   :  { %v78_v28 = vsub.f32 1.0, %v170_v26 }
  0x6d   :  { %v79_v29 = vmul.f32 %v78_v28, %v78_v28 }
  0x6f   :  { %v80_v31 = vmul.f32 -1.0, %v79_v29 }
  0x71   :  { %v83_v32 = vmul.f32 %v82_v30, %v80_v31 }
  0x73   :  { %85 = vst.msk [vmem:[#allocation2] sm:$0x1] %vm84_vm2, %v83_v32 }
  0x7a   :  { %v149_v33 = vld [vmem:[#allocation2] ss:$0 sm:$0xff] }
  0x7b   :  { %95 = vperm.xlu0 %160, %v149_v33   ;;  %107 = vperm.xlu1 %162, %v149_v33  }
  0x7f   :  { %161 = vset.pattern.permute.xlu0 %v242_v34  ;;  %163 = vset.pattern.permute.xlu1 %v243_v35 }
  0x80   :  { %101 = vperm.xlu0 %161, %v149_v33   ;;  %113 = vperm.xlu1 %163, %v149_v33  }
  0x84   :  { %164 = vset.pattern.permute.xlu0 %v243_v35 }
  0xf6   :  { %v96_v37 = vpop.permute.xlu0 %95  ;;  %v108_v38 = vpop.permute.xlu1 %107 }
  0xf7   :  { %v98_v39 = vsel %vm88_vm3, %v96_v37, 0.0 }
  0xfb   :  { %v102_v40 = vpop.permute.xlu0 %101  ;;  %v114_v41 = vpop.permute.xlu1 %113 }
  0xfc   :  { %v104_v42 = vsel %vm99_vm4, %v102_v40, %v98_v39 }
  0xfd   :  { %v110_v43 = vsel %vm105_vm5, %v108_v38, %v104_v42 }
  0xfe   :  { %v116_v44 = vsel %vm111_vm6, %v114_v41, %v110_v43 }
  0xff   :  { %118 = vadd.xlane.f32.xlu1 %v116_v44 }
 0x188   :  { %v119_v45 = vpop.xlane.xlu1 %118 }
 0x189   :  { %v120_v46 = vrot.slane %v119_v45, 4 }
 0x18b   :  { %v121_v47 = vadd.f32 %v120_v46, %v119_v45 }
 0x18d   :  { %v122_v48 = vrot.slane %v121_v47, 2 }
 0x18f   :  { %v123_v49 = vadd.f32 %v122_v48, %v121_v47 }
 0x191   :  { %v124_v50 = vrot.slane %v123_v49, 1 }
 0x193   :  { %v125_v51 = vadd.f32 %v124_v50, %v123_v49 }
 0x195   :  { %150 = vpush %v125_v51 }
 0x1c6   :  { %s151_s23 = spop %150 }
 0x1c7   :  { %v127_v53 = vstv %s151_s23 }
 0x1c8   :  { %v128_v54 = vadd.f32 %v127_v53, %v117_v52 }
 0x1ca   :  { %130 = vst.msk [vmem:[#allocation8] sm:$0x1] %vm51_vm0, %v128_v54 }
 0x1cb   :  { %222 = shalt.err (!%p219_p0)
}
 0x1cc   :  { %140 = dma.vmem_to_hbm [thread:$0]  %s138_s22, 16, %s282_s3, [#allocation5]  }
 0x1cd   :  { %235 = dma.done.wait [#allocation5], 16  }
 0x1ce   :  { %236 = vsyncadd [#allocation5], 4294967280 }
 0x1cf   :  { %144 = vsyncpa [#allocation4], 1 }
 0x1d0   :  { %145 = vsyncpa [#allocation7], 1 }
 0x1d1   :  { %146 = vsyncpa [#allocation5], 1 }

</bundles_post_ra>
